<compile_context>
chip_gen: v5e
topology: v5e:2x2
jax: 0.10.0
libtpu: 0.0.40
codegen_flags: <defaults>
</compile_context>

<pallas_src>
import functools

import jax
import jax.numpy as jnp
from jax import lax
from jax.experimental import pallas as pl
from jax.experimental.pallas import tpu as pltpu

LANES = 128
MAX_BLOCK_ROWS = 4096      # (4096, 128) f32 = 2 MiB per input per pipeline buffer
CHUNK_ROWS = 32            # rows per inner-loop sub-tile (4 f32 vregs / array)
UNROLL = 4                 # sub-tiles per fori_loop step (scheduler visibility)


def _partial_sums_kernel(x_ref, t_ref, out_ref, *, block_rows, chunk_rows,
                         unroll, tiles, tiles_per_part, rem, last_block_full):
    """Accumulates per-lane [sum(x), sum(t), sum(x*t), sum(bce)] into out_ref.

    out_ref block: (1, 4, 8, LANES) float32, resident across the inner
    (reduction) grid axis.
    """
    p = pl.program_id(0)
    k = pl.program_id(1)
    logical_block = p * tiles_per_part + k

    @pl.when(k == 0)
    def _():
        out_ref[...] = jnp.zeros_like(out_ref)

    n_chunks = block_rows // chunk_rows
    n_groups = n_chunks // unroll          # exact by construction (see wrapper)
    zero = jnp.zeros((8, LANES), jnp.float32)

    def chunk_sums(i, local_iota):
        """Partial sums of one (chunk_rows, 128) sub-tile, folded to (8, 128)."""
        start = pl.multiple_of(i * chunk_rows, chunk_rows)
        x = x_ref[pl.ds(start, chunk_rows), :].astype(jnp.float32)
        t = t_ref[pl.ds(start, chunk_rows), :].astype(jnp.float32)
        if local_iota is not None:
            # Tail mask: block-local flat index vs. static remainder.  Select
            # BEFORE the logs so stale VMEM / NaN in the partial last block can
            # never reach the BCE terms.
            m = (i * (chunk_rows * LANES) + local_iota) < rem
            x = jnp.where(m, x, 0.0)
            t = jnp.where(m, t, 0.0)
        xt = x * t
        # PyTorch F.binary_cross_entropy clamps the log terms at -100; this
        # also makes masked (x=0, t=0) slots contribute exactly 0.
        log_x = jnp.maximum(jnp.log(x), -100.0)
        log_1mx = jnp.maximum(jnp.log(1.0 - x), -100.0)
        bce = -(log_1mx + t * (log_x - log_1mx))   # == -(t*log_x + (1-t)*log_1mx)

        def fold(v):   # (chunk_rows,128) -> (8,128): layout-preserving VPU adds
            return v.reshape(chunk_rows // 8, 8, LANES).sum(axis=0)

        return fold(x), fold(t), fold(xt), fold(bce)

    def accumulate(masked):
        if masked:
            r = lax.broadcasted_iota(jnp.int32, (chunk_rows, LANES), 0)
            l = lax.broadcasted_iota(jnp.int32, (chunk_rows, LANES), 1)
            local_iota = r * LANES + l     # compile-time constant, hoisted once
        else:
            local_iota = None

        def body(g, carry):
            for u in range(unroll):        # static unroll inside the loop body
                sx, st, sxt, sbce = chunk_sums(g * unroll + u, local_iota)
                carry = (carry[0] + sx, carry[1] + st,
                         carry[2] + sxt, carry[3] + sbce)
            return carry

        ax, at, axt, abce = lax.fori_loop(0, n_groups, body,
                                          (zero, zero, zero, zero))
        out_ref[0, 0] += ax
        out_ref[0, 1] += at
        out_ref[0, 2] += axt
        out_ref[0, 3] += abce

    if last_block_full:
        # No ragged tail: every in-range block takes the unmasked fast path.
        @pl.when(logical_block < tiles)
        def _():
            accumulate(masked=False)
    else:
        @pl.when(logical_block < tiles - 1)
        def _():
            accumulate(masked=False)

        @pl.when(logical_block == tiles - 1)
        def _():
            accumulate(masked=True)
    # logical_block >= tiles (overrun steps from the parallel split) skip
    # compute entirely; their DMA just re-reads a clamped valid block.


def bce_dice_tversky_loss(inputs, targets, smooth=1.0, alpha=0.5, beta=0.5):
    """Pallas TPU implementation of BCEDiceTverskyLoss.forward."""
    x = inputs.reshape(-1)
    t = targets.reshape(-1)
    n = int(x.shape[0])

    # Tiny pad (< 8*128 elements) so the flat array views as (rows, 128) with
    # rows % 8 == 0; padded slots are masked (and are exact zeros) in-kernel.
    pad = (-n) % (8 * LANES)
    if pad:
        x = jnp.pad(x, (0, pad))
        t = jnp.pad(t, (0, pad))
    rows = (n + pad) // LANES

    # Static block / chunk geometry.
    block_rows = min(MAX_BLOCK_ROWS, rows)
    if block_rows % (CHUNK_ROWS * UNROLL) == 0:
        chunk_rows, unroll = CHUNK_ROWS, UNROLL
    elif block_rows % CHUNK_ROWS == 0:
        chunk_rows, unroll = CHUNK_ROWS, 1
    else:
        chunk_rows, unroll = 8, 1          # rows is always a multiple of 8

    tiles = pl.cdiv(rows, block_rows)
    # Split the block stream across TensorCores (helps v7x; harmless elsewhere).
    # TODO(synk): on v7x verify 2-TC sharding in xprof; if only one TC streams,
    # switch the leading axis to pltpu.CORE_PARALLEL / an explicit core_map.
    num_parts = 2 if tiles >= 2 else 1
    tiles_per_part = pl.cdiv(tiles, num_parts)

    # Valid elements in the last logical block (static Python int -> the tail
    # mask is one compare against a constant; no int32 overflow for huge N).
    rem = n - (tiles - 1) * block_rows * LANES
    last_block_full = (rem == block_rows * LANES)

    x2 = x.reshape(rows, LANES)
    t2 = t.reshape(rows, LANES)

    def in_map(p, k):
        blk = p * tiles_per_part + k
        # Clamp so overrun grid steps DMA a valid block; the kernel skips their
        # compute entirely.
        return (jnp.minimum(blk, tiles - 1), 0)

    kernel = functools.partial(
        _partial_sums_kernel,
        block_rows=int(block_rows), chunk_rows=int(chunk_rows),
        unroll=int(unroll), tiles=int(tiles),
        tiles_per_part=int(tiles_per_part), rem=int(rem),
        last_block_full=bool(last_block_full))

    bytes_accessed = (x2.size * x2.dtype.itemsize
                      + t2.size * t2.dtype.itemsize
                      + num_parts * 4 * 8 * LANES * 4)
    cost = pl.CostEstimate(flops=16 * n, transcendentals=2 * n,
                           bytes_accessed=int(bytes_accessed))

    partials = pl.pallas_call(
        kernel,
        out_shape=jax.ShapeDtypeStruct((num_parts, 4, 8, LANES), jnp.float32),
        grid_spec=pltpu.PrefetchScalarGridSpec(
            num_scalar_prefetch=0,
            grid=(num_parts, tiles_per_part),
            in_specs=[
                pl.BlockSpec((block_rows, LANES), in_map),
                pl.BlockSpec((block_rows, LANES), in_map),
            ],
            out_specs=pl.BlockSpec((1, 4, 8, LANES),
                                   lambda p, k: (p, 0, 0, 0)),
        ),
        compiler_params=pltpu.CompilerParams(
            dimension_semantics=("parallel", "arbitrary"),
            # 2 inputs x 2 buffers x 2 MiB (f32) = 8 MiB streaming working set;
            # 32 MiB leaves pipelining headroom on every generation (v7x has
            # 64 MiB/TC physical, v5e/v6e have 128 MiB).
            vmem_limit_bytes=32 * 1024 * 1024),
        cost_estimate=cost,
    )(x2, t2)

    # Tiny cross-lane reduction + scalar loss formula in plain JAX.
    sums = jnp.sum(partials, axis=(0, 2, 3))           # (4,)
    sum_x, sum_t, tp, bce_sum = sums[0], sums[1], sums[2], sums[3]

    fp = sum_x - tp                                     # sum((1 - t) * x)
    fn = sum_t - tp                                     # sum(t * (1 - x))

    dice_loss = 1.0 - (2.0 * tp + smooth) / (sum_x + sum_t + smooth)
    bce_mean = bce_sum / n
    tversky = (tp + smooth) / (tp + alpha * fp + beta * fn + smooth)
    return 1.0 - tversky + bce_mean + dice_loss


def _reference_loss(inputs, targets, smooth=1.0, alpha=0.5, beta=0.5):
    x = inputs.reshape(-1).astype(jnp.float32)
    t = targets.reshape(-1).astype(jnp.float32)
    tp = jnp.sum(x * t)
    fp = jnp.sum((1.0 - t) * x)
    fn = jnp.sum(t * (1.0 - x))
    intersection = tp
    dice_loss = 1.0 - (2.0 * intersection + smooth) / (jnp.sum(x) + jnp.sum(t) + smooth)
    bce = jnp.mean(-(t * jnp.maximum(jnp.log(x), -100.0)
                     + (1.0 - t) * jnp.maximum(jnp.log(1.0 - x), -100.0)))
    tversky = (tp + smooth) / (tp + alpha * fp + beta * fn + smooth)
    return 1.0 - tversky + bce + dice_loss


if __name__ == "__main__":
    key = jax.random.PRNGKey(0)

    # Test 1: NCHW shape matching the PyTorch convention (fully-valid blocks).
    k1, k2, k3, k4 = jax.random.split(key, 4)
    shape = (2, 4, 16, 16)
    # inputs must be probabilities in (0, 1) for binary_cross_entropy
    inputs = jax.nn.sigmoid(jax.random.normal(k1, shape, dtype=jnp.float32))
    targets = (jax.random.uniform(k2, shape) > 0.5).astype(jnp.float32)

    loss = bce_dice_tversky_loss(inputs, targets)
    jax.block_until_ready(loss)
    ref = _reference_loss(inputs, targets)
    assert jnp.allclose(loss, ref, rtol=1e-5, atol=1e-5), (loss, ref)

    # Test 2: ragged size (exercises the masked tail path).
    shape2 = (2, 3, 17, 19)
    inputs2 = jax.nn.sigmoid(jax.random.normal(k3, shape2, dtype=jnp.float32))
    targets2 = (jax.random.uniform(k4, shape2) > 0.5).astype(jnp.float32)

    loss2 = bce_dice_tversky_loss(inputs2, targets2)
    jax.block_until_ready(loss2)
    ref2 = _reference_loss(inputs2, targets2)
    assert jnp.allclose(loss2, ref2, rtol=1e-5, atol=1e-5), (loss2, ref2)

    print("KERNEL_OK")
</pallas_src>

<mosaic_0001>
module attributes {stable_mosaic.version = 11 : i64} {
  func.func @_partial_sums_kernel(%arg0: i32, %arg1: i32, %arg2: memref<16x128xf32, #tpu.memory_space<vmem>>, %arg3: memref<16x128xf32, #tpu.memory_space<vmem>>, %arg4: memref<1x4x8x128xf32, #tpu.memory_space<vmem>>) attributes {dimension_semantics = [#tpu.dimension_semantics<parallel>, #tpu.dimension_semantics<arbitrary>], iteration_bounds = array<i64: 1, 1>, scalar_prefetch = 0 : i64, scratch_operands = 0 : i64, tpu.core_type = #tpu.core_type<tc>, window_params = [{transform_indices = @transform_0, window_bounds = array<i64: 16, 128>}, {transform_indices = @transform_1, window_bounds = array<i64: 16, 128>}, {transform_indices = @transform_2, window_bounds = array<i64: 1, 4, 8, 128>}]} {
    %c1_i32 = arith.constant 1 : i32
    %0 = arith.muli %arg0, %c1_i32 : i32
    %1 = arith.addi %0, %arg1 : i32
    %c0_i32 = arith.constant 0 : i32
    %2 = arith.cmpi eq, %arg1, %c0_i32 : i32
    %3 = arith.extui %2 : i1 to i32
    %c0_i32_0 = arith.constant 0 : i32
    %4 = arith.cmpi ne, %3, %c0_i32_0 : i32
    scf.if %4 {
      %cst_3 = arith.constant 0.000000e+00 : f32
      %9 = vector.broadcast %cst_3 : f32 to vector<1x4x8x128xf32>
      %c0 = arith.constant 0 : index
      %c0_4 = arith.constant 0 : index
      %c0_5 = arith.constant 0 : index
      %c0_6 = arith.constant 0 : index
      %10 = vector.load %arg4[%c0, %c0_4, %c0_5, %c0_6] : memref<1x4x8x128xf32, #tpu.memory_space<vmem>>, vector<1x4x8x128xf32>
      tpu.vector_store %arg4[%c0, %c0_4, %c0_5, %c0_6], %9 {strides = array<i32>} : memref<1x4x8x128xf32, #tpu.memory_space<vmem>>, vector<1x4x8x128xf32>,
    } else {
    }
    %cst = arith.constant 0.000000e+00 : f32
    %5 = vector.broadcast %cst : f32 to vector<8x128xf32>
    %c1_i32_1 = arith.constant 1 : i32
    %6 = arith.cmpi slt, %1, %c1_i32_1 : i32
    %7 = arith.extui %6 : i1 to i32
    %c0_i32_2 = arith.constant 0 : i32
    %8 = arith.cmpi ne, %7, %c0_i32_2 : i32
    scf.if %8 {
      %c0_i32_3 = arith.constant 0 : i32
      %c2_i32 = arith.constant 2 : i32
      %9 = arith.addi %c0_i32_3, %c2_i32 : i32
      %c1_i32_4 = arith.constant 1 : i32
      %10:4 = scf.for %arg5 = %c0_i32_3 to %9 step %c1_i32_4 iter_args(%arg6 = %5, %arg7 = %5, %arg8 = %5, %arg9 = %5) -> (vector<8x128xf32>, vector<8x128xf32>, vector<8x128xf32>, vector<8x128xf32>)  : i32 {
        %c1_i32_34 = arith.constant 1 : i32
        %35 = arith.muli %arg5, %c1_i32_34 : i32
        %c0_i32_35 = arith.constant 0 : i32
        %36 = arith.addi %35, %c0_i32_35 : i32
        %c8_i32 = arith.constant 8 : i32
        %37 = arith.muli %36, %c8_i32 : i32
        %38 = tpu.assume_multiple %37, 8 : i32
        %39 = arith.index_cast %38 : i32 to index
        %c0_36 = arith.constant 0 : index
        %40 = vector.load %arg2[%39, %c0_36] : memref<16x128xf32, #tpu.memory_space<vmem>>, vector<8x128xf32>
        %41 = arith.index_cast %38 : i32 to index
        %c0_37 = arith.constant 0 : index
        %42 = vector.load %arg3[%41, %c0_37] : memref<16x128xf32, #tpu.memory_space<vmem>>, vector<8x128xf32>
        %43 = arith.mulf %40, %42 : vector<8x128xf32>
        %44 = math.log %40 : vector<8x128xf32>
        %cst_38 = arith.constant -1.000000e+02 : f32
        %45 = vector.broadcast %cst_38 : f32 to vector<8x128xf32>
        %46 = arith.maximumf %44, %45 : vector<8x128xf32>
        %cst_39 = arith.constant 1.000000e+00 : f32
        %47 = vector.broadcast %cst_39 : f32 to vector<8x128xf32>
        %48 = arith.subf %47, %40 : vector<8x128xf32>
        %49 = math.log %48 : vector<8x128xf32>
        %cst_40 = arith.constant -1.000000e+02 : f32
        %50 = vector.broadcast %cst_40 : f32 to vector<8x128xf32>
        %51 = arith.maximumf %49, %50 : vector<8x128xf32>
        %52 = arith.subf %46, %51 : vector<8x128xf32>
        %53 = arith.mulf %42, %52 : vector<8x128xf32>
        %54 = arith.addf %51, %53 : vector<8x128xf32>
        %cst_41 = arith.constant 0.000000e+00 : f32
        %55 = vector.broadcast %cst_41 : f32 to vector<8x128xf32>
        %56 = arith.subf %55, %54 : vector<8x128xf32>
        %57 = vector.shape_cast %40 : vector<8x128xf32> to vector<1x8x128xf32>
        %cst_42 = arith.constant dense<0.000000e+00> : vector<8x128xf32>
        %58 = vector.multi_reduction <add>, %57, %cst_42 [0] : vector<1x8x128xf32> to vector<8x128xf32>
        %59 = vector.shape_cast %42 : vector<8x128xf32> to vector<1x8x128xf32>
        %cst_43 = arith.constant dense<0.000000e+00> : vector<8x128xf32>
        %60 = vector.multi_reduction <add>, %59, %cst_43 [0] : vector<1x8x128xf32> to vector<8x128xf32>
        %61 = vector.shape_cast %43 : vector<8x128xf32> to vector<1x8x128xf32>
        %cst_44 = arith.constant dense<0.000000e+00> : vector<8x128xf32>
        %62 = vector.multi_reduction <add>, %61, %cst_44 [0] : vector<1x8x128xf32> to vector<8x128xf32>
        %63 = vector.shape_cast %56 : vector<8x128xf32> to vector<1x8x128xf32>
        %cst_45 = arith.constant dense<0.000000e+00> : vector<8x128xf32>
        %64 = vector.multi_reduction <add>, %63, %cst_45 [0] : vector<1x8x128xf32> to vector<8x128xf32>
        %65 = arith.addf %arg6, %58 : vector<8x128xf32>
        %66 = arith.addf %arg7, %60 : vector<8x128xf32>
        %67 = arith.addf %arg8, %62 : vector<8x128xf32>
        %68 = arith.addf %arg9, %64 : vector<8x128xf32>
        scf.yield %65, %66, %67, %68 : vector<8x128xf32>, vector<8x128xf32>, vector<8x128xf32>, vector<8x128xf32>
      }
      %c2_i32_5 = arith.constant 2 : i32
      %c0 = arith.constant 0 : index
      %c0_6 = arith.constant 0 : index
      %c0_7 = arith.constant 0 : index
      %c0_8 = arith.constant 0 : index
      %11 = vector.load %arg4[%c0, %c0_6, %c0_7, %c0_8] : memref<1x4x8x128xf32, #tpu.memory_space<vmem>>, vector<1x1x8x128xf32>
      %12 = vector.shape_cast %11 : vector<1x1x8x128xf32> to vector<8x128xf32>
      %13 = arith.addf %12, %10#0 : vector<8x128xf32>
      %c0_9 = arith.constant 0 : index
      %c0_10 = arith.constant 0 : index
      %c0_11 = arith.constant 0 : index
      %c0_12 = arith.constant 0 : index
      %14 = vector.load %arg4[%c0_9, %c0_10, %c0_11, %c0_12] : memref<1x4x8x128xf32, #tpu.memory_space<vmem>>, vector<1x1x8x128xf32>
      %15 = vector.shape_cast %14 : vector<1x1x8x128xf32> to vector<8x128xf32>
      %16 = vector.shape_cast %13 : vector<8x128xf32> to vector<1x1x8x128xf32>
      tpu.vector_store %arg4[%c0_9, %c0_10, %c0_11, %c0_12], %16 {strides = array<i32>} : memref<1x4x8x128xf32, #tpu.memory_space<vmem>>, vector<1x1x8x128xf32>,
      %c0_13 = arith.constant 0 : index
      %c1 = arith.constant 1 : index
      %c0_14 = arith.constant 0 : index
      %c0_15 = arith.constant 0 : index
      %17 = vector.load %arg4[%c0_13, %c1, %c0_14, %c0_15] : memref<1x4x8x128xf32, #tpu.memory_space<vmem>>, vector<1x1x8x128xf32>
      %18 = vector.shape_cast %17 : vector<1x1x8x128xf32> to vector<8x128xf32>
      %19 = arith.addf %18, %10#1 : vector<8x128xf32>
      %c0_16 = arith.constant 0 : index
      %c1_17 = arith.constant 1 : index
      %c0_18 = arith.constant 0 : index
      %c0_19 = arith.constant 0 : index
      %20 = vector.load %arg4[%c0_16, %c1_17, %c0_18, %c0_19] : memref<1x4x8x128xf32, #tpu.memory_space<vmem>>, vector<1x1x8x128xf32>
      %21 = vector.shape_cast %20 : vector<1x1x8x128xf32> to vector<8x128xf32>
      %22 = vector.shape_cast %19 : vector<8x128xf32> to vector<1x1x8x128xf32>
      tpu.vector_store %arg4[%c0_16, %c1_17, %c0_18, %c0_19], %22 {strides = array<i32>} : memref<1x4x8x128xf32, #tpu.memory_space<vmem>>, vector<1x1x8x128xf32>,
      %c0_20 = arith.constant 0 : index
      %c2 = arith.constant 2 : index
      %c0_21 = arith.constant 0 : index
      %c0_22 = arith.constant 0 : index
      %23 = vector.load %arg4[%c0_20, %c2, %c0_21, %c0_22] : memref<1x4x8x128xf32, #tpu.memory_space<vmem>>, vector<1x1x8x128xf32>
      %24 = vector.shape_cast %23 : vector<1x1x8x128xf32> to vector<8x128xf32>
      %25 = arith.addf %24, %10#2 : vector<8x128xf32>
      %c0_23 = arith.constant 0 : index
      %c2_24 = arith.constant 2 : index
      %c0_25 = arith.constant 0 : index
      %c0_26 = arith.constant 0 : index
      %26 = vector.load %arg4[%c0_23, %c2_24, %c0_25, %c0_26] : memref<1x4x8x128xf32, #tpu.memory_space<vmem>>, vector<1x1x8x128xf32>
      %27 = vector.shape_cast %26 : vector<1x1x8x128xf32> to vector<8x128xf32>
      %28 = vector.shape_cast %25 : vector<8x128xf32> to vector<1x1x8x128xf32>
      tpu.vector_store %arg4[%c0_23, %c2_24, %c0_25, %c0_26], %28 {strides = array<i32>} : memref<1x4x8x128xf32, #tpu.memory_space<vmem>>, vector<1x1x8x128xf32>,
      %c0_27 = arith.constant 0 : index
      %c3 = arith.constant 3 : index
      %c0_28 = arith.constant 0 : index
      %c0_29 = arith.constant 0 : index
      %29 = vector.load %arg4[%c0_27, %c3, %c0_28, %c0_29] : memref<1x4x8x128xf32, #tpu.memory_space<vmem>>, vector<1x1x8x128xf32>
      %30 = vector.shape_cast %29 : vector<1x1x8x128xf32> to vector<8x128xf32>
      %31 = arith.addf %30, %10#3 : vector<8x128xf32>
      %c0_30 = arith.constant 0 : index
      %c3_31 = arith.constant 3 : index
      %c0_32 = arith.constant 0 : index
      %c0_33 = arith.constant 0 : index
      %32 = vector.load %arg4[%c0_30, %c3_31, %c0_32, %c0_33] : memref<1x4x8x128xf32, #tpu.memory_space<vmem>>, vector<1x1x8x128xf32>
      %33 = vector.shape_cast %32 : vector<1x1x8x128xf32> to vector<8x128xf32>
      %34 = vector.shape_cast %31 : vector<8x128xf32> to vector<1x1x8x128xf32>
      tpu.vector_store %arg4[%c0_30, %c3_31, %c0_32, %c0_33], %34 {strides = array<i32>} : memref<1x4x8x128xf32, #tpu.memory_space<vmem>>, vector<1x1x8x128xf32>,
    } else {
    }
    return
  }
  func.func @transform_0(%arg0: i32, %arg1: i32) -> (i32, i32) {
    %c1_i32 = arith.constant 1 : i32
    %0 = arith.muli %arg0, %c1_i32 : i32
    %1 = arith.addi %0, %arg1 : i32
    %c0_i32 = arith.constant 0 : i32
    %2 = arith.minsi %1, %c0_i32 : i32
    %c0_i32_0 = arith.constant 0 : i32
    %c0_i32_1 = arith.constant 0 : i32
    return %2, %c0_i32_0 : i32, i32
  }
  func.func @transform_1(%arg0: i32, %arg1: i32) -> (i32, i32) {
    %c1_i32 = arith.constant 1 : i32
    %0 = arith.muli %arg0, %c1_i32 : i32
    %1 = arith.addi %0, %arg1 : i32
    %c0_i32 = arith.constant 0 : i32
    %2 = arith.minsi %1, %c0_i32 : i32
    %c0_i32_0 = arith.constant 0 : i32
    %c0_i32_1 = arith.constant 0 : i32
    return %2, %c0_i32_0 : i32, i32
  }
  func.func @transform_2(%arg0: i32, %arg1: i32) -> (i32, i32, i32, i32) {
    %c0_i32 = arith.constant 0 : i32
    %c0_i32_0 = arith.constant 0 : i32
    %c0_i32_1 = arith.constant 0 : i32
    %c0_i32_2 = arith.constant 0 : i32
    return %arg0, %c0_i32, %c0_i32_0, %c0_i32_1 : i32, i32, i32, i32
  }
}

</mosaic_0001>

<bundles_post_ra>
// kernel: tpu_custom_call.1
= control target key start
LH: loop header
LB: loop body
LE: loop exit
PB: predicated region body
PF: predicated region fallthrough
CT: control target
= control target key end

     0   :  { %7 = vsyncpa [#allocation3], 0  ;;  %s389_s0 = inlined_call_operand.hbm [shape: f32[16,128], index: 0, kind: input, shape index: {}]   ;;  %s390_s1 = inlined_call_operand.hbm [shape: f32[16,128], index: 1, kind: input, shape index: {}]   ;;  %s391_s2 = inlined_call_operand.hbm [shape: f32[1,4,8,128], index: 2, kind: output, shape index: {}]  }
   0x1   :  { %8 = vsyncpa [#allocation6], 0 }
   0x2   :  { %9 = vsyncpa [#allocation4], 0  ;;  %s20_s11 = sshll.u32 %s389_s0, 4  ;;  %s341_s12 = smov [#allocation2]   ;;  %s21_s11 = int_to_ptr.hbm [resolvable:$true] %s20_s11 }
   0x3   :  { %s22_s13 = sshll.u32 %s341_s12, 4  ;;  %s39_s16 = sshll.u32 %s390_s1, 4  ;;  %s23_s13 = int_to_ptr.vmem [resolvable:$true] %s22_s13  ;;  %s40_s16 = int_to_ptr.hbm [resolvable:$true] %s39_s16 }
   0x4   :  { %s342_s17 = smov 128   ;;  %s343_s18 = smov 8  }
   0x5   :  { %28 = dma.hbm_to_vmem [thread:$0]  %s21_s11, 256, %s23_s13, [#allocation3], %s342_s17, %s342_s17, %s343_s18  }
   0x6   :  { %s344_s19 = smov [#allocation5]  }
   0x7   :  { %s41_s20 = sshll.u32 %s344_s19, 4  ;;  %s42_s20 = int_to_ptr.vmem [resolvable:$true] %s41_s20 }
   0x8   :  { %47 = dma.hbm_to_vmem [thread:$0]  %s40_s16, 256, %s42_s20, [#allocation6], %s342_s17, %s342_s17, %s343_s18  }
   0x9   :  { %315 = dma.done.wait [#allocation3], 256  }
   0xa   :  { %316 = vsyncadd [#allocation3], 4294967040 }
   0xb   :  { %317 = dma.done.wait [#allocation6], 256  }
   0xc   :  { %318 = vsyncadd [#allocation6], 4294967040  ;;  %v345_v0 = vmov 0.0   ;;  %v321_v1 = vmov 0.0   ;;  %v325_v2 = vmov 0.0   ;;  %v329_v3 = vmov 0.0  }
   0xd   :  { %69 = vst [vmem:[#allocation7] sm:$0xff] %v345_v0  ;;  %v333_v4 = vmov 0.0   ;;  %s374_s0 = smov 0  }
   0xe   :  { %70 = vst [vmem:[#allocation7 + $0x8] sm:$0xff] %v345_v0 }
   0xf   :  { %71 = vst [vmem:[#allocation7 + $0x10] sm:$0xff] %v345_v0 }
  0x10   :  { %72 = vst [vmem:[#allocation7 + $0x18] sm:$0xff] %v345_v0 }
  0x11 LB: > { %s172_s1 = sshll.u32 %s339_s0, 3  ;;  %s82_s0 = sadd.s32 1, %s339_s0   ;;  %s339_s0 = sphi %s374_s0, %s82_s0   ;;  %v335_v4 = vphi %v333_v4, %v334_v4   ;;  %v331_v3 = vphi %v329_v3, %v330_v3   ;;  %v327_v2 = vphi %v325_v2, %v326_v2   ;;  %v323_v1 = vphi %v321_v1, %v322_v1  }
  0x12   : > { %s88_s21 = scalar_lea.vmem [#allocation2], %s172_s1  ;;  %s90_s22 = scalar_lea.vmem [#allocation5], %s172_s1 }
  0x13   : > { %v89_v5 = vld [vmem:[%s88_s21] sm:$0xff]  ;;  %p79_p0 = scmp.ge.s32.totalorder %s82_s0, 2  }
  0x14   : > { %v91_v6 = vld [vmem:[%s90_s22] sm:$0xff]  ;;  %219 = vlog2.f32 %v89_v5  ;;  %v96_v8 = vsub.f32 1.0, %v89_v5  ;;  %v108_v9 = vadd.f32 %v335_v4, %v89_v5   ;;  %s346_s23 = smov (%p79_p0), [#allocation7]   ;;  %s133_s27 = sshll.u32 (%p79_p0), %s391_s2, 4  ;;  %s134_s27 = int_to_ptr.hbm [resolvable:$true] %s133_s27 }
  0x15   : > { %v92_v7 = vmul.f32 %v91_v6, %v89_v5  ;;  %v109_v10 = vadd.f32 %v331_v3, %v91_v6   ;;  %v112_v23 = vld [vmem:[#allocation7] sm:$0xff] (%p79_p0)  ;;  %v116_v24 = vld [vmem:[#allocation7 + $0x8] sm:$0xff] (%p79_p0)  ;;  %s131_s24 = sshll.u32 (%p79_p0), %s346_s23, 4  ;;  %s132_s24 = int_to_ptr.vmem [resolvable:$true] %s131_s24 }
  0x16   : > { %221 = vlog2.f32 %v96_v8  ;;  %v334_v4 = vmov %v108_v9   ;;  %v120_v25 = vld [vmem:[#allocation7 + $0x10] sm:$0xff] (%p79_p0)  ;;  %v113_v26 = vadd.f32 (%p79_p0), %v112_v23, %v108_v9 }
  0x17   : > { %v110_v11 = vadd.f32 %v327_v2, %v92_v7   ;;  %v330_v3 = vmov %v109_v10   ;;  %v117_v27 = vadd.f32 (%p79_p0), %v116_v24, %v109_v10  ;;  %v124_v29 = vld [vmem:[#allocation7 + $0x18] sm:$0xff] (%p79_p0) }
  0x18   :  { %114 = vst [vmem:[#allocation7] sm:$0xff] (%p79_p0), %v113_v26 }
  0x19   : > { %v326_v2 = vmov %v110_v11   ;;  %v121_v28 = vadd.f32 (%p79_p0), %v120_v25, %v110_v11  ;;  %118 = vst [vmem:[#allocation7 + $0x8] sm:$0xff] (%p79_p0), %v117_v27 }
  0x1a   : > { %v220_v12 = vpop.eup %219 }
  0x1b   : > { %v94_v13 = vmul.f32 0.6931472, %v220_v12  ;;  %122 = vst [vmem:[#allocation7 + $0x10] sm:$0xff] (%p79_p0), %v121_v28 }
  0x1c   : > { %v222_v14 = vpop.eup %221 }
  0x1d   : > { %v95_v15 = vmax.f32 %v94_v13, -100.0  ;;  %v98_v16 = vmul.f32 0.6931472, %v222_v14 }
  0x1f   : > { %v99_v17 = vmax.f32 %v98_v16, -100.0 }
  0x21   : > { %v100_v18 = vsub.f32 %v95_v15, %v99_v17 }
  0x23   : > { %v101_v19 = vmul.f32 %v100_v18, %v91_v6 }
  0x25   : > { %v102_v20 = vadd.f32 %v101_v19, %v99_v17 }
  0x27   : > { %v103_v21 = vsub.f32 0.0, %v102_v20  ;;  %81 = sbr.rel (!%p79_p0) target bundleno = 17 (0x11), region = 58 }
  0x29   : > { %v111_v22 = vadd.f32 %v323_v1, %v103_v21  }
  0x2b   : > { %v322_v1 = vmov %v111_v22   ;;  %v125_v30 = vadd.f32 (%p79_p0), %v124_v29, %v111_v22 }
  0x2d   :  { %126 = vst [vmem:[#allocation7 + $0x18] sm:$0xff] %v125_v30 }
  0x2e   :  { %139 = dma.vmem_to_hbm [thread:$0]  %s132_s24, 512, %s134_s27, [#allocation4], %s342_s17, %s342_s17, %s343_s18  }
  0x2f   :  { %319 = dma.done.wait [#allocation4], 512  }
  0x30   :  { %320 = vsyncadd [#allocation4], 4294966784 }
  0x31   :  { %144 = vsyncpa [#allocation3], 1 }
  0x32   :  { %145 = vsyncpa [#allocation6], 1 }
  0x33   :  { %146 = vsyncpa [#allocation4], 1 }

</bundles_post_ra>
